<compile_context>
chip_gen: v6e
topology: v6e:2x2x1
jax: 0.10.0
libtpu: 0.0.40
codegen_flags: <defaults>
</compile_context>

<pallas_src>
import functools

import jax
import jax.numpy as jnp
from jax import lax
from jax.experimental import pallas as pl
from jax.experimental.pallas import tpu as pltpu


def _layernorm_kernel(x_ref, w_ref, b_ref, o_ref, *, eps):
    # x_ref / o_ref: (Bb, C, tn); w_ref / b_ref: (C, 1) float32.
    x = x_ref[...].astype(jnp.float32)
    u = jnp.mean(x, axis=-2, keepdims=True)          # (Bb, 1, tn)
    d = x - u
    s = jnp.mean(d * d, axis=-2, keepdims=True)      # (Bb, 1, tn)
    y = d * lax.rsqrt(s + eps)                        # (Bb, C, tn)
    o_ref[...] = (w_ref[...] * y + b_ref[...]).astype(o_ref.dtype)


def _vmem_capacity_bytes():
    """Physical VMEM of the attached TPU (64 MiB on v7x, 128 MiB on v5e/v6e)."""
    try:
        cap = getattr(pltpu.get_tpu_info(), "vmem_capacity_bytes", None)
        if cap:
            return int(cap)
    except Exception:
        pass
    return 64 << 20  # assume the smallest (v7x) if the query is unavailable


def _choose_tiling(B, C, N, itemsize, vmem_capacity_bytes):
    """Pick (block_b, tile_n) so each grid step moves >= ~2 MiB of data while the
    double-buffered footprint stays well inside physical VMEM."""
    esize = max(itemsize, 4)                 # stats / temporaries are f32
    col_bytes = C * esize                    # one lane column of one image
    target_block = 2 << 20                   # >= ~2 MiB -> ~85% of HBM roofline
    max_block = (4 << 20) if vmem_capacity_bytes <= (64 << 20) else (12 << 20)
    n_up = pl.cdiv(N, 128) * 128

    if B == 1 or col_bytes * n_up >= target_block:
        # Large spatial extent: one image per step, tile the lane (spatial) axis.
        tn = (max_block // col_bytes) // 128 * 128
        tn = max(128, min(tn, 16384, n_up))
        # Keep >= 2 grid steps when possible (both v7x TensorCores get work).
        while B * pl.cdiv(N, tn) < 2 and tn > 128:
            tn = max(128, pl.cdiv(tn // 2, 128) * 128)
        return 1, tn

    # Small spatial extent: take the whole spatial axis per block and batch
    # several images per grid step so per-step bytes stay near target_block.
    bb = max(1, min(B, target_block // (col_bytes * N)))
    steps = pl.cdiv(B, bb)
    # Nudge to an even step count for the v7x megacore when it doesn't shrink
    # blocks below ~1 MiB (a single step always gets split if B >= 2).
    if steps % 2 == 1 and B >= 2:
        bb_alt = pl.cdiv(B, steps + 1)
        if steps == 1 or bb_alt * col_bytes * N >= (1 << 20):
            bb = bb_alt
    return bb, N


def layernorm_channel_first(x, weight, bias, eps=1e-6, block_b=None, tile_n=None):
    """x: (B, C, *spatial); weight/bias: (C,). Returns same shape/dtype as x."""
    shape = x.shape
    B, C = shape[0], shape[1]
    N = 1
    for s in shape[2:]:
        N *= s
    itemsize = jnp.dtype(x.dtype).itemsize

    vmem_cap = _vmem_capacity_bytes()
    if block_b is None or tile_n is None:
        bb_auto, tn_auto = _choose_tiling(B, C, N, itemsize, vmem_cap)
        block_b = bb_auto if block_b is None else block_b
        tile_n = tn_auto if tile_n is None else tile_n

    x3 = x.reshape(B, C, N)
    # Hoisted affine params: f32, (C, 1) so they broadcast against (Bb, C, tn).
    w2 = weight.astype(jnp.float32).reshape(C, 1)
    b2 = bias.astype(jnp.float32).reshape(C, 1)

    grid = (pl.cdiv(B, block_b), pl.cdiv(N, tile_n))

    # VMEM budget: double-buffered in/out blocks + f32 temporaries + headroom.
    in_bytes = block_b * C * tile_n * itemsize
    f32_bytes = block_b * C * tile_n * 4
    limit_cap = (48 << 20) if vmem_cap <= (64 << 20) else (96 << 20)
    vmem_limit = min(limit_cap, max(32 << 20, 4 * in_bytes + 4 * f32_bytes + (1 << 20)))

    out = pl.pallas_call(
        functools.partial(_layernorm_kernel, eps=eps),
        out_shape=jax.ShapeDtypeStruct((B, C, N), x.dtype),
        grid_spec=pltpu.PrefetchScalarGridSpec(
            num_scalar_prefetch=0,
            grid=grid,
            in_specs=[
                pl.BlockSpec((block_b, C, tile_n), lambda i, j: (i, 0, j)),
                pl.BlockSpec((C, 1), lambda i, j: (0, 0)),
                pl.BlockSpec((C, 1), lambda i, j: (0, 0)),
            ],
            out_specs=pl.BlockSpec((block_b, C, tile_n), lambda i, j: (i, 0, j)),
        ),
        compiler_params=pltpu.CompilerParams(
            dimension_semantics=("parallel", "parallel"),
            vmem_limit_bytes=vmem_limit,
        ),
    )(x3, w2, b2)

    return out.reshape(shape)


def _reference(x, weight, bias, eps=1e-6):
    u = jnp.mean(x, axis=1, keepdims=True)
    s = jnp.mean((x - u) ** 2, axis=1, keepdims=True)
    xn = (x - u) / jnp.sqrt(s + eps)
    return weight[None, :, None, None, None] * xn + bias[None, :, None, None, None]


if __name__ == "__main__":
    key = jax.random.PRNGKey(0)

    def run_case(B, C, T, H, W, case_id, **tiles):
        kx, kw, kb = jax.random.split(jax.random.fold_in(key, case_id), 3)
        x = jax.random.normal(kx, (B, C, T, H, W), dtype=jnp.float32)
        # Deterministic "trained-ish" params (module init is ones/zeros; perturb
        # so the affine path is actually exercised).
        weight = jnp.ones((C,), jnp.float32) + 0.1 * jax.random.normal(kw, (C,), jnp.float32)
        bias = 0.1 * jax.random.normal(kb, (C,), jnp.float32)

        out = layernorm_channel_first(x, weight, bias, eps=1e-6, **tiles)
        out = jax.block_until_ready(out)

        ref = _reference(x, weight, bias, eps=1e-6)
        assert out.shape == x.shape and out.dtype == x.dtype
        assert jnp.allclose(out, ref, atol=1e-5, rtol=1e-5), "mismatch vs reference"

    # Small spatial extent (N = 4*7*7 = 196): whole-N blocks, batched images per step.
    run_case(2, 32, 4, 7, 7, 1)
    # Forced lane tiling with a partial edge block (N = 260, tile_n = 128) to
    # exercise the no-pad / masked-edge-store path.
    run_case(2, 8, 2, 10, 13, 2, block_b=1, tile_n=128)

    print("KERNEL_OK")
</pallas_src>

<mosaic_0001>
module attributes {stable_mosaic.version = 11 : i64} {
  func.func @_layernorm_kernel(%arg0: i32, %arg1: i32, %arg2: memref<1x32x196xf32, #tpu.memory_space<vmem>>, %arg3: memref<32x1xf32, #tpu.memory_space<vmem>>, %arg4: memref<32x1xf32, #tpu.memory_space<vmem>>, %arg5: memref<1x32x196xf32, #tpu.memory_space<vmem>>) attributes {dimension_semantics = [#tpu.dimension_semantics<parallel>, #tpu.dimension_semantics<parallel>], iteration_bounds = array<i64: 2, 1>, scalar_prefetch = 0 : i64, scratch_operands = 0 : i64, tpu.core_type = #tpu.core_type<tc>, window_params = [{transform_indices = @transform_0, window_bounds = array<i64: 1, 32, 196>}, {pipeline_mode = #tpu.pipeline_mode<synchronous>, transform_indices = @transform_1, window_bounds = array<i64: 32, 1>}, {pipeline_mode = #tpu.pipeline_mode<synchronous>, transform_indices = @transform_2, window_bounds = array<i64: 32, 1>}, {transform_indices = @transform_3, window_bounds = array<i64: 1, 32, 196>}]} {
    %c0 = arith.constant 0 : index
    %c0_0 = arith.constant 0 : index
    %c0_1 = arith.constant 0 : index
    %0 = vector.load %arg2[%c0, %c0_0, %c0_1] : memref<1x32x196xf32, #tpu.memory_space<vmem>>, vector<1x32x196xf32>
    %cst = arith.constant dense<0.000000e+00> : vector<1x196xf32>
    %1 = vector.multi_reduction <add>, %0, %cst [1] : vector<1x32x196xf32> to vector<1x196xf32>
    %2 = vector.shape_cast %1 : vector<1x196xf32> to vector<1x1x196xf32>
    %cst_2 = arith.constant 3.200000e+01 : f32
    %3 = vector.broadcast %cst_2 : f32 to vector<1x1x196xf32>
    %4 = arith.divf %2, %3 : vector<1x1x196xf32>
    %5 = vector.broadcast %4 : vector<1x1x196xf32> to vector<1x32x196xf32>
    %6 = arith.subf %0, %5 : vector<1x32x196xf32>
    %7 = arith.mulf %6, %6 : vector<1x32x196xf32>
    %cst_3 = arith.constant dense<0.000000e+00> : vector<1x196xf32>
    %8 = vector.multi_reduction <add>, %7, %cst_3 [1] : vector<1x32x196xf32> to vector<1x196xf32>
    %9 = vector.shape_cast %8 : vector<1x196xf32> to vector<1x1x196xf32>
    %cst_4 = arith.constant 3.200000e+01 : f32
    %10 = vector.broadcast %cst_4 : f32 to vector<1x1x196xf32>
    %11 = arith.divf %9, %10 : vector<1x1x196xf32>
    %cst_5 = arith.constant 9.99999997E-7 : f32
    %12 = vector.broadcast %cst_5 : f32 to vector<1x1x196xf32>
    %13 = arith.addf %11, %12 : vector<1x1x196xf32>
    %14 = math.rsqrt %13 : vector<1x1x196xf32>
    %15 = vector.broadcast %14 : vector<1x1x196xf32> to vector<1x32x196xf32>
    %16 = arith.mulf %6, %15 : vector<1x32x196xf32>
    %c0_6 = arith.constant 0 : index
    %c0_7 = arith.constant 0 : index
    %17 = vector.load %arg3[%c0_6, %c0_7] : memref<32x1xf32, #tpu.memory_space<vmem>>, vector<32x1xf32>
    %18 = vector.shape_cast %17 : vector<32x1xf32> to vector<1x32x1xf32>
    %19 = vector.broadcast %18 : vector<1x32x1xf32> to vector<1x32x196xf32>
    %20 = arith.mulf %19, %16 : vector<1x32x196xf32>
    %c0_8 = arith.constant 0 : index
    %c0_9 = arith.constant 0 : index
    %21 = vector.load %arg4[%c0_8, %c0_9] : memref<32x1xf32, #tpu.memory_space<vmem>>, vector<32x1xf32>
    %22 = vector.shape_cast %21 : vector<32x1xf32> to vector<1x32x1xf32>
    %23 = vector.broadcast %22 : vector<1x32x1xf32> to vector<1x32x196xf32>
    %24 = arith.addf %20, %23 : vector<1x32x196xf32>
    %c0_10 = arith.constant 0 : index
    %c0_11 = arith.constant 0 : index
    %c0_12 = arith.constant 0 : index
    %25 = vector.load %arg5[%c0_10, %c0_11, %c0_12] : memref<1x32x196xf32, #tpu.memory_space<vmem>>, vector<1x32x196xf32>
    tpu.vector_store %arg5[%c0_10, %c0_11, %c0_12], %24 {strides = array<i32>} : memref<1x32x196xf32, #tpu.memory_space<vmem>>, vector<1x32x196xf32>,
    return
  }
  func.func @transform_0(%arg0: i32, %arg1: i32) -> (i32, i32, i32) {
    %c0_i32 = arith.constant 0 : i32
    %c0_i32_0 = arith.constant 0 : i32
    return %arg0, %c0_i32, %arg1 : i32, i32, i32
  }
  func.func @transform_1(%arg0: i32, %arg1: i32) -> (i32, i32) {
    %c0_i32 = arith.constant 0 : i32
    %c0_i32_0 = arith.constant 0 : i32
    %c0_i32_1 = arith.constant 0 : i32
    return %c0_i32, %c0_i32_0 : i32, i32
  }
  func.func @transform_2(%arg0: i32, %arg1: i32) -> (i32, i32) {
    %c0_i32 = arith.constant 0 : i32
    %c0_i32_0 = arith.constant 0 : i32
    %c0_i32_1 = arith.constant 0 : i32
    return %c0_i32, %c0_i32_0 : i32, i32
  }
  func.func @transform_3(%arg0: i32, %arg1: i32) -> (i32, i32, i32) {
    %c0_i32 = arith.constant 0 : i32
    %c0_i32_0 = arith.constant 0 : i32
    return %arg0, %c0_i32, %arg1 : i32, i32, i32
  }
}

</mosaic_0001>

<bundles_post_ra>
// kernel: tpu_custom_call.1
= control target key start
LH: loop header
LB: loop body
LE: loop exit
PB: predicated region body
PF: predicated region fallthrough
CT: control target
= control target key end

     0   :  { %8 = vsyncpa [#allocation3], 0  ;;  %s893_s0 = inlined_call_operand.hbm [shape: f32[2,32,196], index: 0, kind: input, shape index: {}]   ;;  %s894_s1 = inlined_call_operand.vmem [shape: f32[32,1], index: 1, kind: input, shape index: {}]   ;;  %s895_s2 = inlined_call_operand.vmem [shape: f32[32,1], index: 2, kind: input, shape index: {}]   ;;  %s896_s3 = inlined_call_operand.hbm [shape: f32[2,32,196], index: 3, kind: output, shape index: {}]  }
   0x1   :  { %10 = vsyncpa [#allocation3 + $0x1], 0 }
   0x2   :  { %11 = vsyncpa [#allocation4], 0 }
   0x3   :  { %13 = vsyncpa [#allocation4 + $0x1], 0  ;;  %s697_s12 = smov 0   ;;  %s699_s13 = smov 0  }
   0x4   :  { %s701_s14 = smov 0   ;;  %s703_s15 = smov 0  }
   0x5   :  { %s705_s16 = smov 0   ;;  %s707_s17 = smov 0  }
   0x6 LB: > { %s470_s18 = sadd.s32 4294967295, %s668_s17   ;;  %s471_s19 = sadd.s32 4294967294, %s668_s17   ;;  %s668_s17 = sphi %s707_s17, %s19_s17   ;;  %s664_s16 = sphi %s705_s16, %s907_s16   ;;  %s660_s15 = sphi %s703_s15, %s906_s15   ;;  %s656_s14 = sphi %s701_s14, %s905_s14   ;;  %s652_s13 = sphi %s699_s13, %s904_s13   ;;  %s648_s12 = sphi %s697_s12, %s903_s12  }
   0x7   : > { %s31_s20 = sadd.s32 1, %s664_s16  ;;  %s40_s21 = sadd.s32 1, %s656_s14 }
   0x8   : > { %p33_p0 = scmp.ge.s32.totalorder %s31_s20, 2  ;;  %p47_p1 = scmp.ne.s32.totalorder %s656_s14, %s652_s13 }
   0x9   : > { %p48_p2 = scmp.eq.s32.totalorder %s668_s17, 0  ;;  %p53_p3 = scmp.ne.s32.totalorder %s652_s13, %s648_s12 }
   0xa   : > { %s909_s20 = smov (%p33_p0, %s31_s20), 0  ;;  %p54_p5 = scmp.eq.s32.totalorder %s470_s18, 0 }
   0xb   : > { %p738_p4 = por %p48_p2, %p47_p1  ;;  %s35_s23 = ssub.s32 %s664_s16, %s909_s20 }
   0xc   : > { %p121_p6 = scmp.eq.s32.totalorder %s470_s18, 1  ;;  %p38_p7 = scmp.eq.s32.totalorder %s35_s23, 0 }
   0xd   : > { %p744_p8 = por %p54_p5, %p53_p3  ;;  %p127_p10 = scmp.eq.s32.totalorder %s471_s19, 1 }
   0xe   : > { %p748_p9 = por %p121_p6, %p47_p1  ;;  %p499_p13 = scmp.lt.s32.totalorder %s668_s17, 2 }
   0xf   : > { %s753_s26 = scalar_select %p38_p7, %s656_s14, %s40_s21  }
  0x10   : > { %p755_p11 = por %p127_p10, %p53_p3  ;;  %s153_s28 = sand.u32 1, %s656_s14  }
  0x11   : > { %s474_s29 = sshll.u32 %s153_s28, 6  ;;  %s485_s30 = sshll.u32 %s664_s16, 10 }
  0x12   : > { %s165_s6 = scalar_lea.hbm %s893_s0, %s485_s30  ;;  %s157_s7 = scalar_lea.vmem [#allocation2], %s474_s29 }
  0x13   : > { %s166_s8 = sshll.u32 %s157_s7, 4  ;;  %p768_p0 = pnand %p499_p13, %p738_p4  ;;  %s167_s8 = int_to_ptr.vmem [resolvable:$true] %s166_s8 }
  0x14   : > { %p477_p1 = scmp.ge.s32.totalorder %s668_s17, 1  ;;  %s154_s10 = scalar_lea.sflag [#allocation3], %s153_s28 }
  0x15   : > { %p562_p2 = pneg %p768_p0  ;;  %s573_s11 = scalar_lea.vmem %s167_s8, 1024 }
  0x16   : > { %p574_p3 = scmp.ne.s32.totalorder %s167_s8, %s573_s11  ;;  %s670_s18 = smov [#allocation2]  }
  0x17   : > { %s578_s19 = sshll.u32 %s670_s18, 4  ;;  %s579_s19 = int_to_ptr.vmem [resolvable:$false] %s578_s19 }
  0x18   : > { %p576_p5 = pnand %p574_p3, %p562_p2  ;;  %s580_s21 = scalar_lea.vmem %s579_s19, 2048 }
  0x19   : > { %p581_p7 = scmp.lt.s32.totalorder %s167_s8, %s579_s19  ;;  %p582_p10 = scmp.lt.s32.totalorder %s580_s21, %s573_s11 }
  0x1a   : > { %p577_p6 = pneg %p576_p5 }
  0x1b   : > { %p583_p12 = por %p582_p10, %p581_p7 }
  0x1d   : > { %p584_p4 = pnand %p583_p12, %p577_p6 }
  0x1f   : > { %587 = shalt.err (!%p584_p4)
}
  0x20   : > { %s671_s22 = smov 256   ;;  %s672_s23 = smov 16  }
  0x21   : > { %494 = dma.hbm_to_vmem [thread:$0]  (!%p768_p0), %s165_s6, 1024, %s167_s8, %s154_s10, %s671_s22, %s671_s22, %s672_s23  }
  0x22   : > { %p174_p13 = scmp.lt.s32.totalorder %s668_s17, 3 }
  0x24   : > { %p175_p2 = pnand %p477_p1, %p174_p13 }
  0x25   : > { %s781_s28 = sand.u32 (!%p175_p2), 1, %s652_s13  }
  0x26   : > { %178 = sbr.rel (%p175_p2) target bundleno = 199 (0xc7), region = 32  ;;  %s478_s29 = sshll.u32 (!%p175_p2), %s781_s28, 6 }
  0x27   : > { %s181_s30 = scalar_lea.sflag (!%p175_p2), [#allocation3], %s781_s28  ;;  %s787_s4 = scalar_lea.vmem (!%p175_p2), [#allocation2], %s478_s29 }
  0x2b   : > { %639 = dma.done.wait (%p744_p8), %s181_s30, 1024  }
  0x2c   : > { %641 = vsyncadd (%p744_p8), %s181_s30, 4294966272  ;;  %v673_v0 = vmov 0   ;;  %v297_v1 = vld [vmem:[%s894_s1 + $0x10] sm:$0xff]  ;;  %v295_v2 = vld [vmem:[%s894_s1] sm:$0xff]  ;;  %vm226_vm0 = vcmask 556032   ;;  %s486_s8 = sshll.u32 %s660_s15, 10 }
  0x2d   : > { %555 = vset.pattern.permute.xlu1 %v673_v0  ;;  %554 = vset.pattern.permute.xlu0 %v673_v0  ;;  %v298_v3 = vld [vmem:[%s894_s1 + $0x18] sm:$0xff]  ;;  %v296_v4 = vld [vmem:[%s894_s1 + $0x8] sm:$0xff]  ;;  %v327_v6 = vld [vmem:[%s895_s2] sm:$0xff]  ;;  %s843_s9 = scalar_lea.hbm %s896_s3, %s486_s8  ;;  %s368_s10 = scalar_lea.sflag [#allocation4], %s781_s28 }
  0x2e   : > { %311 = vperm.xlu1 %555, %v297_v1   ;;  %301 = vperm.xlu0 %554, %v295_v2   ;;  %v328_v5 = vld [vmem:[%s895_s2 + $0x8] sm:$0xff]  ;;  %v330_v7 = vld [vmem:[%s895_s2 + $0x18] sm:$0xff]  ;;  %v329_v8 = vld [vmem:[%s895_s2 + $0x10] sm:$0xff]  ;;  %s674_s11 = smov [#allocation5]  }
  0x2f   : > { %v210_v9 = vld [vmem:[%s787_s4 + $0x8] sm:$0xff]  ;;  %v212_v10 = vld [vmem:[%s787_s4 + $0x18] sm:$0xff]  ;;  %v209_v14 = vld [vmem:[%s787_s4] sm:$0xff]  ;;  %s592_s18 = sshll.u32 %s674_s11, 4  ;;  %s593_s18 = int_to_ptr.vmem [resolvable:$false] %s592_s18 }
  0x30   : > { %v227_v11 = vsel %vm226_vm0, %v210_v9, 0.0  ;;  %v228_v12 = vsel %vm226_vm0, %v212_v10, 0.0  ;;  %v214_v13 = vld [vmem:[%s787_s4 + $0x28] sm:$0xff]  ;;  %v211_v15 = vld [vmem:[%s787_s4 + $0x10] sm:$0xff]  ;;  %v216_v18 = vld [vmem:[%s787_s4 + $0x38] sm:$0xff]  ;;  %s594_s19 = scalar_lea.vmem %s593_s18, 2048 }
  0x31   : > { %v229_v16 = vadd.f32 %v228_v12, %v227_v11  ;;  %v230_v17 = vsel %vm226_vm0, %v214_v13, 0.0  ;;  %v217_v19 = vadd.f32 %v211_v15, %v209_v14  ;;  %v213_v20 = vld [vmem:[%s787_s4 + $0x20] sm:$0xff]  ;;  %v232_v22 = vsel %vm226_vm0, %v216_v18, 0.0  ;;  %v215_v24 = vld [vmem:[%s787_s4 + $0x30] sm:$0xff]  ;;  %s206_s4 = scalar_lea.vmem [#allocation5], %s478_s29 }
  0x32   : > { %316 = vperm.xlu1 %555, %v298_v3   ;;  %306 = vperm.xlu0 %554, %v296_v4   ;;  %s383_s7 = sshll.u32 %s206_s4, 4  ;;  %s836_s7 = int_to_ptr.vmem [resolvable:$true] %s383_s7 }
  0x33   : > { %v231_v21 = vadd.f32 %v230_v17, %v229_v16  ;;  %v218_v23 = vadd.f32 %v217_v19, %v213_v20  ;;  %s588_s24 = scalar_lea.vmem %s836_s7, 1024  ;;  %p595_p1 = scmp.lt.s32.totalorder %s836_s7, %s593_s18 }
  0x34   : > { %p589_p8 = scmp.ne.s32.totalorder %s836_s7, %s588_s24  ;;  %p596_p3 = scmp.lt.s32.totalorder %s594_s19, %s588_s24 }
  0x35   : > { %v233_v25 = vadd.f32 %v232_v22, %v231_v21  ;;  %v219_v26 = vadd.f32 %v218_v23, %v215_v24 }
  0x36   : > { %338 = vperm.xlu1 %555, %v328_v5   ;;  %333 = vperm.xlu0 %554, %v327_v6   ;;  %p590_p12 = pnand %p589_p8, %p748_p9  ;;  %p597_p5 = por %p596_p3, %p595_p1 }
  0x37   : > { %v234_v27 = vrot.slane %v233_v25, 4  ;;  %v220_v28 = vrot.slane %v219_v26, 4 }
  0x38   : > { %p591_p0 = pneg %p590_p12 }
  0x39   : > { %v235_v29 = vadd.f32 %v234_v27, %v233_v25  ;;  %v221_v30 = vadd.f32 %v220_v28, %v219_v26 }
  0x3a   : > { %348 = vperm.xlu1 %555, %v330_v7   ;;  %343 = vperm.xlu0 %554, %v329_v8   ;;  %p598_p6 = pnand %p597_p5, %p591_p0 }
  0x3b   : > { %v236_v31 = vrot.slane %v235_v29, 2  ;;  %v222_v32 = vrot.slane %v221_v30, 2 }
  0x3d   : > { %v237_v33 = vadd.f32 %v236_v31, %v235_v29  ;;  %v223_v34 = vadd.f32 %v222_v32, %v221_v30 }
  0x3f   : > { %v238_v35 = vrot.slane %v237_v33, 1  ;;  %v224_v36 = vrot.slane %v223_v34, 1 }
  0x41   : > { %v239_v37 = vadd.f32 %v238_v35, %v237_v33  ;;  %v225_v38 = vadd.f32 %v224_v36, %v223_v34 }
  0x43   : > { %v242_v39 = vmul.f32 0.03125, %v239_v37  ;;  %v241_v40 = vmul.f32 0.03125, %v225_v38 }
  0x45   : > { %v244_v41 = vsub.f32 %v210_v9, %v242_v39  ;;  %v246_v42 = vsub.f32 %v212_v10, %v242_v39  ;;  %v243_v43 = vsub.f32 %v209_v14, %v241_v40  ;;  %v245_v44 = vsub.f32 %v211_v15, %v241_v40 }
  0x46   : > { %v248_v45 = vsub.f32 %v214_v13, %v242_v39  ;;  %v247_v48 = vsub.f32 %v213_v20, %v241_v40  ;;  %v250_v51 = vsub.f32 %v216_v18, %v242_v39  ;;  %v249_v55 = vsub.f32 %v215_v24, %v241_v40 }
  0x47   : > { %v252_v46 = vmul.f32 %v244_v41, %v244_v41  ;;  %v254_v47 = vmul.f32 %v246_v42, %v246_v42  ;;  %v251_v49 = vmul.f32 %v243_v43, %v243_v43  ;;  %v253_v50 = vmul.f32 %v245_v44, %v245_v44 }
  0x48   : > { %v256_v52 = vmul.f32 %v248_v45, %v248_v45  ;;  %v255_v56 = vmul.f32 %v247_v48, %v247_v48  ;;  %v258_v59 = vmul.f32 %v250_v51, %v250_v51  ;;  %v257_v61 = vmul.f32 %v249_v55, %v249_v55 }
  0x49   : > { %v268_v53 = vsel %vm226_vm0, %v252_v46, 0.0  ;;  %v269_v54 = vsel %vm226_vm0, %v254_v47, 0.0  ;;  %v259_v57 = vadd.f32 %v253_v50, %v251_v49 }
  0x4a   : > { %v270_v58 = vadd.f32 %v269_v54, %v268_v53  ;;  %v271_v60 = vsel %vm226_vm0, %v256_v52, 0.0  ;;  %v273_v0 = vsel %vm226_vm0, %v258_v59, 0.0 }
  0x4b   : > { %v260_v62 = vadd.f32 %v259_v57, %v255_v56 }
  0x4c   : > { %v272_v63 = vadd.f32 %v271_v60, %v270_v58 }
  0x4d   : > { %v261_v1 = vadd.f32 %v260_v62, %v257_v61 }
  0x4e   : > { %v274_v2 = vadd.f32 %v273_v0, %v272_v63 }
  0x4f   : > { %v262_v3 = vrot.slane %v261_v1, 4 }
  0x50   : > { %v275_v4 = vrot.slane %v274_v2, 4 }
  0x51   : > { %v263_v5 = vadd.f32 %v262_v3, %v261_v1 }
  0x52   : > { %v276_v6 = vadd.f32 %v275_v4, %v274_v2 }
  0x53   : > { %v264_v7 = vrot.slane %v263_v5, 2 }
  0x54   : > { %v277_v8 = vrot.slane %v276_v6, 2 }
  0x55   : > { %v265_v9 = vadd.f32 %v264_v7, %v263_v5 }
  0x56   : > { %v278_v10 = vadd.f32 %v277_v8, %v276_v6 }
  0x57   : > { %v266_v11 = vrot.slane %v265_v9, 1 }
  0x58   : > { %v279_v12 = vrot.slane %v278_v10, 1 }
  0x59   : > { %v267_v13 = vadd.f32 %v266_v11, %v265_v9 }
  0x5a   : > { %v280_v14 = vadd.f32 %v279_v12, %v278_v10 }
  0x5b   : > { %v281_v15 = vmul.f32 0.03125, %v267_v13 }
  0x5c   : > { %v282_v16 = vmul.f32 0.03125, %v280_v14 }
  0x5d   : > { %v283_v17 = vadd.f32 1e-06, %v281_v15 }
  0x5e   : > { %v284_v18 = vadd.f32 1e-06, %v282_v16 }
  0x5f   : > { %556 = vrsqrt.f32 %v283_v17 }
  0x60   : > { %558 = vrsqrt.f32 %v284_v18 }
  0x6c   : > { %v557_v19 = vpop.eup %556 }
  0x6d   : > { %v559_v20 = vpop.eup %558  ;;  %v287_v23 = vmul.f32 %v557_v19, %v243_v43  ;;  %v289_v25 = vmul.f32 %v557_v19, %v245_v44  ;;  %v291_v29 = vmul.f32 %v557_v19, %v247_v48  ;;  %v293_v31 = vmul.f32 %v557_v19, %v249_v55 }
  0x6e   : > { %v288_v24 = vmul.f32 %v559_v20, %v244_v41  ;;  %v290_v26 = vmul.f32 %v559_v20, %v246_v42  ;;  %v292_v30 = vmul.f32 %v559_v20, %v248_v45  ;;  %v294_v32 = vmul.f32 %v559_v20, %v250_v51 }
  0xa9   : > { %v312_v21 = vpop.permute.xlu1 %311  ;;  %v302_v22 = vpop.permute.xlu0 %301 }
  0xaa   : > { %v319_v33 = vmul.f32 %v302_v22, %v287_v23  ;;  %v320_v34 = vmul.f32 %v302_v22, %v288_v24  ;;  %v323_v43 = vmul.f32 %v312_v21, %v291_v29  ;;  %v324_v44 = vmul.f32 %v312_v21, %v292_v30 }
  0xad   : > { %v317_v27 = vpop.permute.xlu1 %316  ;;  %v307_v28 = vpop.permute.xlu0 %306 }
  0xae   : > { %v321_v35 = vmul.f32 %v307_v28, %v289_v25  ;;  %v322_v36 = vmul.f32 %v307_v28, %v290_v26  ;;  %v325_v46 = vmul.f32 %v317_v27, %v293_v31  ;;  %v326_v45 = vmul.f32 %v317_v27, %v294_v32 }
  0xb1   : > { %v339_v37 = vpop.permute.xlu1 %338  ;;  %v334_v38 = vpop.permute.xlu0 %333 }
  0xb2   : > { %v353_v39 = vadd.f32 %v339_v37, %v321_v35  ;;  %v354_v40 = vadd.f32 %v339_v37, %v322_v36  ;;  %v351_v41 = vadd.f32 %v334_v38, %v319_v33  ;;  %v352_v42 = vadd.f32 %v334_v38, %v320_v34 }
  0xb4   : > { %361 = vst [vmem:[%s206_s4 + $0x10] sm:$0xff] %v353_v39  ;;  %362 = vst.msk [vmem:[%s206_s4 + $0x18] sm:$0xff] %vm226_vm0, %v354_v40 }
  0xb5   : > { %359 = vst [vmem:[%s206_s4] sm:$0xff] %v351_v41  ;;  %360 = vst.msk [vmem:[%s206_s4 + $0x8] sm:$0xff] %vm226_vm0, %v352_v42  ;;  %v349_v47 = vpop.permute.xlu1 %348  ;;  %v344_v48 = vpop.permute.xlu0 %343 }
  0xb6   : > { %v357_v49 = vadd.f32 %v349_v47, %v325_v46  ;;  %v358_v50 = vadd.f32 %v349_v47, %v326_v45  ;;  %v355_v51 = vadd.f32 %v344_v48, %v323_v43  ;;  %v356_v52 = vadd.f32 %v344_v48, %v324_v44 }
  0xb8   : > { %365 = vst [vmem:[%s206_s4 + $0x30] sm:$0xff] %v357_v49  ;;  %366 = vst.msk [vmem:[%s206_s4 + $0x38] sm:$0xff] %vm226_vm0, %v358_v50 }
  0xb9   : > { %363 = vst [vmem:[%s206_s4 + $0x20] sm:$0xff] %v355_v51  ;;  %364 = vst.msk [vmem:[%s206_s4 + $0x28] sm:$0xff] %vm226_vm0, %v356_v52 }
  0xba   : > { %601 = shalt.err (!%p598_p6)
}
  0xbb   : > { %s602_s21 = scalar_lea.hbm %s843_s9, 1024  ;;  %s606_s30 = scalar_lea.hbm %s896_s3, 2048 }
  0xbc   : > { %p603_p7 = scmp.ne.s32.totalorder %s843_s9, %s602_s21  ;;  %p607_p13 = scmp.lt.s32.totalorder %s843_s9, %s896_s3 }
  0xbd   : > { %p608_p2 = scmp.lt.s32.totalorder %s606_s30, %s602_s21 }
  0xbe   : > { %p604_p10 = pnand %p603_p7, %p748_p9 }
  0xbf   : > { %p609_p8 = por %p608_p2, %p607_p13 }
  0xc0   : > { %p605_p4 = pneg %p604_p10 }
  0xc2   : > { %p610_p12 = pnand %p609_p8, %p605_p4 }
  0xc4   : > { %613 = shalt.err (!%p610_p12)
}
  0xc5   : > { %s675_s4 = smov 256   ;;  %s676_s8 = smov 16  }
  0xc6   : > { %489 = dma.vmem_to_hbm [thread:$0]  (%p748_p9), %s836_s7, 1024, %s843_s9, %s368_s10, %s675_s4, %s675_s4, %s676_s8  }
  0xc7 PF: > { %s398_s29 = sand.u32 1, %s648_s12   ;;  %p902_p0 = scmp.ge.s32.totalorder %s668_s17, 2 }
  0xc8   : > { %s399_s15 = scalar_lea.sflag [#allocation4], %s398_s29 }
  0xc9   : > { %p496_p1 = pnand %p902_p0, %p755_p11 }
  0xcb   : > { %p497_p3 = pneg %p496_p1 }
  0xcd   : > { %643 = dma.done.wait (%p497_p3), %s399_s15, 1024  }
  0xce   : > { %645 = vsyncadd (%p497_p3), %s399_s15, 4294966272  ;;  %s19_s17 = sadd.s32 1, %s668_s17   ;;  %s903_s12 = smov %s652_s13 }
  0xcf   : > { %p16_p5 = scmp.ge.s32.totalorder %s19_s17, 4   ;;  %s904_s13 = smov %s656_s14 }
  0xd0   : > { %s905_s14 = smov %s753_s26  ;;  %s906_s15 = smov %s664_s16 }
  0xd1   : > { %s907_s16 = smov %s909_s20  ;;  %18 = sbr.rel (!%p16_p5) target bundleno = 6 (0x6), region = 77 }
  0xd6   :  { %404 = vsyncpa [#allocation3], 1 }
  0xd7   :  { %406 = vsyncpa [#allocation3 + $0x1], 1 }
  0xd8   :  { %407 = vsyncpa [#allocation4], 1 }
  0xd9   :  { %409 = vsyncpa [#allocation4 + $0x1], 1 }

</bundles_post_ra>
